<compile_context>
chip_gen: v6e
topology: v6e:2x2x1
jax: 0.10.0
libtpu: 0.0.40
codegen_flags: <defaults>
</compile_context>

<pallas_src>
import numpy as np
import jax
import jax.numpy as jnp
from jax import lax
from jax.experimental import pallas as pl
from jax.experimental.pallas import tpu as pltpu

NEG_SLOPE = 0.01   # nn.LeakyReLU() default negative_slope
BN_EPS = 1e-5      # nn.BatchNorm2d default eps


# --------------------------- wrapper-side constant builders -----------------

def _interp_matrix_np(n_in, n_out):
    """Row-stochastic bilinear interpolation matrix, align_corners=True."""
    if n_in == 1:
        return np.ones((n_out, 1), np.float32)
    pos = np.arange(n_out, dtype=np.float64) * (n_in - 1) / (n_out - 1)
    lo = np.clip(np.floor(pos).astype(np.int64), 0, n_in - 2)
    frac = (pos - lo).astype(np.float32)
    A = np.zeros((n_out, n_in), np.float32)
    rows = np.arange(n_out)
    A[rows, lo] = 1.0 - frac
    A[rows, lo + 1] += frac
    return A


def _banded_kw(w_kh, W):
    """w_kh: (3, Cin, Cout) kw-taps of one kh row -> (W*Cin, W*Cout) band.

    B[wi*Cin+ci, wo*Cout+co] = w_kh[kw, ci, co] with wi = wo + kw - 1 (zero pad in W
    absorbed: out-of-range taps are dropped), so a 3x3 conv in the (rows, W*C)
    layout becomes one GEMM per kh row tap.
    """
    Cin, Cout = int(w_kh.shape[1]), int(w_kh.shape[2])
    B = jnp.zeros((W, Cin, W, Cout), jnp.float32)
    for kw in range(3):
        wo = np.arange(W)
        wi = wo + kw - 1
        ok = (wi >= 0) & (wi < W)
        S = np.zeros((W, W), np.float32)
        S[wi[ok], wo[ok]] = 1.0
        B = B + jnp.einsum('pq,io->piqo', jnp.asarray(S), w_kh[kw])
    return B.reshape(W * Cin, W * Cout)


# --------------------------- forward -----------------------------------------

def upblock_forward(x1_nchw, x2_nchw, p):
    N, Cin1, H1, W1 = x1_nchw.shape
    _, Cin2, H2, W2 = x2_nchw.shape
    Cout = int(p['w_a'].shape[-1])
    Ccat = 2 * Cin2
    assert H2 == 2 * H1 and W2 == 2 * W1
    assert p['w_a'].shape[2] == Ccat

    f32, bf16 = jnp.float32, jnp.bfloat16

    # Images per grid step: pack the batch to push matmul M towards ~128 rows.
    target = max(1, 128 // H2)
    nb = 1
    for d in range(1, N + 1):
        if N % d == 0 and d <= target:
            nb = d
    G = N // nb
    M = nb * H2

    # ---- activations: channels-last, W folded into lanes, bf16 ---------------
    x1r = jnp.transpose(x1_nchw, (0, 2, 3, 1)).astype(bf16).reshape(N * H1, W1 * Cin1)
    # x2 laid out directly into its channel slots of the concat layout (128-wide,
    # lane-dense); the y slots are zero and filled in-kernel (torch.cat fused away).
    x2_nhwc = jnp.transpose(x2_nchw, (0, 2, 3, 1)).astype(bf16)
    x2w = jnp.zeros((N, H2, W2, Ccat), bf16).at[..., :Cin2].set(x2_nhwc)
    x2w = x2w.reshape(N * H2, W2 * Ccat)

    # ---- (1x1 conv) x (bilinear width upsample), targeted at the y slots -----
    Aw = _interp_matrix_np(W1, W2)
    Ah = _interp_matrix_np(H1, H2)
    upw4 = jnp.einsum('pw,ic->wipc', jnp.asarray(Aw), p['w1x1'])      # (W1,Cin1,W2,Cin2)
    upw = jnp.zeros((W1, Cin1, W2, Ccat), f32).at[:, :, :, Cin2:].set(upw4)
    upw = upw.reshape(W1 * Cin1, W2 * Ccat).astype(bf16)
    b1w = jnp.zeros((W2, Ccat), f32).at[:, Cin2:].set(p['b1x1']).reshape(1, W2 * Ccat)
    # Block-diagonal (per image) bilinear height-upsample matrix.
    ahb = jnp.asarray(np.kron(np.eye(nb, dtype=np.float32), Ah)).astype(bf16)  # (M, nb*H1)

    # ---- conv_a / conv_b: fold BN scale, banded kw weights, kh stacked on K --
    scale_a = p['g_a'] / jnp.sqrt(p['v_a'] + BN_EPS)
    bias_a = p['be_a'] + (p['b_a'] - p['m_a']) * scale_a
    wa = p['w_a'] * scale_a
    wa_f = jnp.concatenate([_banded_kw(wa[kh], W2) for kh in range(3)],
                           axis=0).astype(bf16)                       # (3*W2*Ccat, W2*Cout)
    ba_row = jnp.broadcast_to(bias_a, (W2, Cout)).reshape(1, W2 * Cout)

    scale_b = p['g_b'] / jnp.sqrt(p['v_b'] + BN_EPS)
    bias_b = p['be_b'] + (p['b_b'] - p['m_b']) * scale_b
    wb = p['w_b'] * scale_b
    wb_f = jnp.concatenate([_banded_kw(wb[kh], W2) for kh in range(3)],
                           axis=0).astype(bf16)                       # (3*W2*Cout, W2*Cout)
    bb_row = jnp.broadcast_to(bias_b, (W2, Cout)).reshape(1, W2 * Cout)

    # --------------------------- Pallas kernel --------------------------------
    def kernel(x1_ref, x2w_ref, upw_ref, ahb_ref, b1_ref,
               wa_ref, ba_ref, wb_ref, bb_ref, o_ref):
        # 1x1 conv + bilinear x2 upsample (align_corners=True), written into the
        # y-channel slots of the concat layout (x2 slots of upw/b1 are zero).
        t = jnp.dot(x1_ref[...], upw_ref[...], preferred_element_type=f32) + b1_ref[...]
        y = jnp.dot(ahb_ref[...], t.astype(bf16), preferred_element_type=f32)
        cat = x2w_ref[...].astype(f32) + y              # fused torch.cat([x2, up(x1)])

        def taps3(v):
            # 3 row taps of a 3x3 conv (zero padding at each image's first/last row),
            # lane-concatenated so the conv collapses to one GEMM (offsets % 128 == 0).
            r = lax.broadcasted_iota(jnp.int32, v.shape, 0) % H2
            z = jnp.zeros_like(v[:1])
            up = jnp.where(r == 0, jnp.zeros_like(v),
                           jnp.concatenate([z, v[:-1]], axis=0))
            dn = jnp.where(r == H2 - 1, jnp.zeros_like(v),
                           jnp.concatenate([v[1:], z], axis=0))
            return jnp.concatenate([up, v, dn], axis=1)

        # conv_a (3x3, pad 1) + folded BN + LeakyReLU : one GEMM, K = 3*W2*2*Cin2.
        a = jnp.dot(taps3(cat).astype(bf16), wa_ref[...], preferred_element_type=f32)
        a = a + ba_ref[...]
        a = jnp.where(a > 0, a, NEG_SLOPE * a)

        # conv_b (3x3, pad 1) + folded BN + LeakyReLU : one GEMM, K = 3*W2*Cout.
        o = jnp.dot(taps3(a).astype(bf16), wb_ref[...], preferred_element_type=f32)
        o = o + bb_ref[...]
        o = jnp.where(o > 0, o, NEG_SLOPE * o)
        o_ref[...] = o.astype(o_ref.dtype)              # lane-dense (W2*Cout) store

    flops = int(2 * (
        (N * H1) * (W1 * Cin1) * (W2 * Ccat)
        + (N * H2) * (nb * H1) * (W2 * Ccat)
        + (N * H2) * (3 * W2 * Ccat) * (W2 * Cout)
        + (N * H2) * (3 * W2 * Cout) * (W2 * Cout)))
    bytes_accessed = int(
        2 * (x1r.size + x2w.size + upw.size + ahb.size + wa_f.size + wb_f.size)
        + 4 * (b1w.size + ba_row.size + bb_row.size)
        + 4 * (N * H2 * W2 * Cout))

    out = pl.pallas_call(
        kernel,
        out_shape=jax.ShapeDtypeStruct((N * H2, W2 * Cout), f32),
        grid=(G,),
        in_specs=[
            pl.BlockSpec((nb * H1, W1 * Cin1), lambda g: (g, 0)),      # x1
            pl.BlockSpec((M, W2 * Ccat), lambda g: (g, 0)),            # x2 (concat slots)
            pl.BlockSpec((W1 * Cin1, W2 * Ccat), lambda g: (0, 0)),    # upw
            pl.BlockSpec((M, nb * H1), lambda g: (0, 0)),              # ahb
            pl.BlockSpec((1, W2 * Ccat), lambda g: (0, 0)),            # b1
            pl.BlockSpec((3 * W2 * Ccat, W2 * Cout), lambda g: (0, 0)),  # wa (fused K)
            pl.BlockSpec((1, W2 * Cout), lambda g: (0, 0)),            # bias_a
            pl.BlockSpec((3 * W2 * Cout, W2 * Cout), lambda g: (0, 0)),  # wb (fused K)
            pl.BlockSpec((1, W2 * Cout), lambda g: (0, 0)),            # bias_b
        ],
        out_specs=pl.BlockSpec((M, W2 * Cout), lambda g: (g, 0)),
        compiler_params=pltpu.CompilerParams(
            dimension_semantics=("parallel",),
            vmem_limit_bytes=32 * 1024 * 1024),
        cost_estimate=pl.CostEstimate(flops=flops, transcendentals=0,
                                      bytes_accessed=bytes_accessed),
    )(x1r, x2w, upw, ahb, b1w, wa_f, ba_row, wb_f, bb_row)

    # (N*H2, W2*Cout) is NHWC flattened on the minor dims; back to NCHW.
    return jnp.transpose(out.reshape(N, H2, W2, Cout), (0, 3, 1, 2))


# --------------------------- pure-JAX f32 reference ---------------------------

def _upsample2x_ref(x):
    N, H, W, C = x.shape
    Ah = jnp.asarray(_interp_matrix_np(H, 2 * H))
    Aw = jnp.asarray(_interp_matrix_np(W, 2 * W))
    y = jnp.einsum('oh,nhwc->nowc', Ah, x, precision=lax.Precision.HIGHEST)
    y = jnp.einsum('pw,nowc->nopc', Aw, y, precision=lax.Precision.HIGHEST)
    return y


def reference_forward(x1_nchw, x2_nchw, p):
    x1 = jnp.transpose(x1_nchw, (0, 2, 3, 1))
    x2 = jnp.transpose(x2_nchw, (0, 2, 3, 1))
    y = jnp.einsum('nhwc,co->nhwo', x1, p['w1x1'],
                   precision=lax.Precision.HIGHEST) + p['b1x1']
    y = _upsample2x_ref(y)
    x = jnp.concatenate([x2, y], axis=-1)

    def block(x, w, b, g, be, m, v):
        z = lax.conv_general_dilated(x, w, (1, 1), 'SAME',
                                     dimension_numbers=('NHWC', 'HWIO', 'NHWC'),
                                     precision=lax.Precision.HIGHEST) + b
        z = (z - m) / jnp.sqrt(v + BN_EPS) * g + be
        return jnp.where(z > 0, z, NEG_SLOPE * z)

    x = block(x, p['w_a'], p['b_a'], p['g_a'], p['be_a'], p['m_a'], p['v_a'])
    x = block(x, p['w_b'], p['b_b'], p['g_b'], p['be_b'], p['m_b'], p['v_b'])
    return jnp.transpose(x, (0, 3, 1, 2))


# --------------------------- main ---------------------------------------------

if __name__ == "__main__":
    in_ch1, in_ch2, out_ch = 8, 4, 16
    N, H1, W1 = 2, 8, 8
    H2, W2 = 2 * H1, 2 * W1
    cin_block = in_ch2 * 2

    ks = jax.random.split(jax.random.PRNGKey(0), 18)
    x1 = jax.random.normal(ks[0], (N, in_ch1, H1, W1), jnp.float32)   # NCHW
    x2 = jax.random.normal(ks[1], (N, in_ch2, H2, W2), jnp.float32)   # NCHW

    # Deterministic synthetic parameters. Conv weights are stored in HWIO
    # (equivalent to PyTorch's OIHW up to a transpose of the init).
    params = dict(
        w1x1=0.3 * jax.random.normal(ks[2], (in_ch1, in_ch2), jnp.float32),
        b1x1=0.1 * jax.random.normal(ks[3], (in_ch2,), jnp.float32),
        w_a=0.2 * jax.random.normal(ks[4], (3, 3, cin_block, out_ch), jnp.float32),
        b_a=0.1 * jax.random.normal(ks[5], (out_ch,), jnp.float32),
        g_a=1.0 + 0.1 * jax.random.normal(ks[6], (out_ch,), jnp.float32),
        be_a=0.1 * jax.random.normal(ks[7], (out_ch,), jnp.float32),
        m_a=0.05 * jax.random.normal(ks[8], (out_ch,), jnp.float32),
        v_a=jax.random.uniform(ks[9], (out_ch,), jnp.float32, 0.5, 1.5),
        w_b=0.2 * jax.random.normal(ks[10], (3, 3, out_ch, out_ch), jnp.float32),
        b_b=0.1 * jax.random.normal(ks[11], (out_ch,), jnp.float32),
        g_b=1.0 + 0.1 * jax.random.normal(ks[12], (out_ch,), jnp.float32),
        be_b=0.1 * jax.random.normal(ks[13], (out_ch,), jnp.float32),
        m_b=0.05 * jax.random.normal(ks[14], (out_ch,), jnp.float32),
        v_b=jax.random.uniform(ks[15], (out_ch,), jnp.float32, 0.5, 1.5),
    )

    out = jax.jit(upblock_forward)(x1, x2, params)
    out = jax.block_until_ready(out)
    assert out.shape == (N, out_ch, H2, W2), out.shape

    ref = reference_forward(x1, x2, params)
    # bf16 matmul operands (f32 accumulation) vs the f32 reference -> looser tolerance.
    np.testing.assert_allclose(np.asarray(out), np.asarray(ref),
                               rtol=2e-2, atol=8e-2)
    print("KERNEL_OK")
</pallas_src>

<mosaic_0001>
module attributes {stable_mosaic.version = 11 : i64} {
  func.func @kernel(%arg0: i32, %arg1: memref<16x64xbf16, #tpu.memory_space<vmem>>, %arg2: memref<32x128xbf16, #tpu.memory_space<vmem>>, %arg3: memref<64x128xbf16, #tpu.memory_space<vmem>>, %arg4: memref<32x16xbf16, #tpu.memory_space<vmem>>, %arg5: memref<1x128xf32, #tpu.memory_space<vmem>>, %arg6: memref<384x256xbf16, #tpu.memory_space<vmem>>, %arg7: memref<1x256xf32, #tpu.memory_space<vmem>>, %arg8: memref<768x256xbf16, #tpu.memory_space<vmem>>, %arg9: memref<1x256xf32, #tpu.memory_space<vmem>>, %arg10: memref<32x256xf32, #tpu.memory_space<vmem>>) attributes {dimension_semantics = [#tpu.dimension_semantics<parallel>], iteration_bounds = array<i64: 1>, scalar_prefetch = 0 : i64, scratch_operands = 0 : i64, tpu.core_type = #tpu.core_type<tc>, window_params = [{transform_indices = @transform_0, window_bounds = array<i64: 16, 64>}, {transform_indices = @transform_1, window_bounds = array<i64: 32, 128>}, {pipeline_mode = #tpu.pipeline_mode<synchronous>, transform_indices = @transform_2, window_bounds = array<i64: 64, 128>}, {pipeline_mode = #tpu.pipeline_mode<synchronous>, transform_indices = @transform_3, window_bounds = array<i64: 32, 16>}, {pipeline_mode = #tpu.pipeline_mode<synchronous>, transform_indices = @transform_4, window_bounds = array<i64: 1, 128>}, {pipeline_mode = #tpu.pipeline_mode<synchronous>, transform_indices = @transform_5, window_bounds = array<i64: 384, 256>}, {pipeline_mode = #tpu.pipeline_mode<synchronous>, transform_indices = @transform_6, window_bounds = array<i64: 1, 256>}, {pipeline_mode = #tpu.pipeline_mode<synchronous>, transform_indices = @transform_7, window_bounds = array<i64: 768, 256>}, {pipeline_mode = #tpu.pipeline_mode<synchronous>, transform_indices = @transform_8, window_bounds = array<i64: 1, 256>}, {transform_indices = @transform_9, window_bounds = array<i64: 32, 256>}]} {
    %c0 = arith.constant 0 : index
    %c0_0 = arith.constant 0 : index
    %0 = vector.load %arg1[%c0, %c0_0] : memref<16x64xbf16, #tpu.memory_space<vmem>>, vector<16x64xbf16>
    %c0_1 = arith.constant 0 : index
    %c0_2 = arith.constant 0 : index
    %1 = vector.load %arg3[%c0_1, %c0_2] : memref<64x128xbf16, #tpu.memory_space<vmem>>, vector<64x128xbf16>
    %cst = arith.constant dense<0.000000e+00> : vector<16x128xf32>
    %2 = tpu.matmul %0, %1, %cst {dimension_numbers = #tpu.dot_dimension_numbers<[1], [0], [0], [1], [0, 0, 1, 1], [], []>} : vector<16x64xbf16>, vector<64x128xbf16>, vector<16x128xf32> -> vector<16x128xf32>
    %c0_3 = arith.constant 0 : index
    %c0_4 = arith.constant 0 : index
    %3 = vector.load %arg5[%c0_3, %c0_4] : memref<1x128xf32, #tpu.memory_space<vmem>>, vector<1x128xf32>
    %4 = vector.broadcast %3 : vector<1x128xf32> to vector<16x128xf32>
    %5 = arith.addf %2, %4 : vector<16x128xf32>
    %c0_5 = arith.constant 0 : index
    %c0_6 = arith.constant 0 : index
    %6 = vector.load %arg4[%c0_5, %c0_6] : memref<32x16xbf16, #tpu.memory_space<vmem>>, vector<32x16xbf16>
    %7 = arith.truncf %5 : vector<16x128xf32> to vector<16x128xbf16>
    %cst_7 = arith.constant dense<0.000000e+00> : vector<32x128xf32>
    %8 = tpu.matmul %6, %7, %cst_7 {dimension_numbers = #tpu.dot_dimension_numbers<[1], [0], [0], [1], [0, 0, 1, 1], [], []>} : vector<32x16xbf16>, vector<16x128xbf16>, vector<32x128xf32> -> vector<32x128xf32>
    %c0_8 = arith.constant 0 : index
    %c0_9 = arith.constant 0 : index
    %9 = vector.load %arg2[%c0_8, %c0_9] : memref<32x128xbf16, #tpu.memory_space<vmem>>, vector<32x128xbf16>
    %10 = arith.extf %9 : vector<32x128xbf16> to vector<32x128xf32>
    %11 = arith.addf %10, %8 : vector<32x128xf32>
    %12 = tpu.iota {dimensions = array<i32: 0>} : vector<32x128xi32>
    %c16_i32 = arith.constant 16 : i32
    %c0_i32 = arith.constant 0 : i32
    %13 = arith.cmpi eq, %c16_i32, %c0_i32 : i32
    %c1_i32 = arith.constant 1 : i32
    %14 = arith.select %13, %c1_i32, %c16_i32 : i32
    %15 = vector.broadcast %14 : i32 to vector<32x128xi32>
    %16 = arith.remsi %12, %15 : vector<32x128xi32>
    %c0_i32_10 = arith.constant 0 : i32
    %17 = vector.broadcast %c0_i32_10 : i32 to vector<32x128xi32>
    %18 = arith.cmpi ne, %16, %17 : vector<32x128xi32>
    %c0_i32_11 = arith.constant 0 : i32
    %19 = vector.broadcast %c0_i32_11 : i32 to vector<32x128xi32>
    %20 = arith.cmpi slt, %16, %19 : vector<32x128xi32>
    %c0_i32_12 = arith.constant 0 : i32
    %21 = arith.cmpi slt, %14, %c0_i32_12 : i32
    %22 = vector.broadcast %21 : i1 to vector<32x128xi1>
    %23 = vector.broadcast %22 : vector<32x128xi1> to vector<32x128xi1>
    %24 = arith.xori %20, %23 : vector<32x128xi1>
    %25 = arith.andi %24, %18 : vector<32x128xi1>
    %26 = vector.broadcast %14 : i32 to vector<32x128xi32>
    %27 = arith.addi %16, %26 : vector<32x128xi32>
    %28 = arith.select %25, %27, %16 : vector<32x128xi1>, vector<32x128xi32>
    %cst_13 = arith.constant 0.000000e+00 : f32
    %29 = vector.broadcast %cst_13 : f32 to vector<1x128xf32>
    %c0_i32_14 = arith.constant 0 : i32
    %30 = vector.broadcast %c0_i32_14 : i32 to vector<32x128xi32>
    %31 = arith.cmpi eq, %28, %30 : vector<32x128xi32>
    %cst_15 = arith.constant 0.000000e+00 : f32
    %32 = vector.broadcast %cst_15 : f32 to vector<32x128xf32>
    %33 = vector.extract_strided_slice %11 {offsets = [0, 0], sizes = [31, 128], strides = [1, 1]} : vector<32x128xf32> to vector<31x128xf32>
    %34 = tpu.concatenate %29, %33 in 0 : vector<1x128xf32>, vector<31x128xf32> -> vector<32x128xf32>
    %35 = arith.select %31, %32, %34 : vector<32x128xi1>, vector<32x128xf32>
    %c15_i32 = arith.constant 15 : i32
    %36 = vector.broadcast %c15_i32 : i32 to vector<32x128xi32>
    %37 = arith.cmpi eq, %28, %36 : vector<32x128xi32>
    %cst_16 = arith.constant 0.000000e+00 : f32
    %38 = vector.broadcast %cst_16 : f32 to vector<32x128xf32>
    %39 = vector.extract_strided_slice %11 {offsets = [1, 0], sizes = [31, 128], strides = [1, 1]} : vector<32x128xf32> to vector<31x128xf32>
    %40 = tpu.concatenate %39, %29 in 0 : vector<31x128xf32>, vector<1x128xf32> -> vector<32x128xf32>
    %41 = arith.select %37, %38, %40 : vector<32x128xi1>, vector<32x128xf32>
    %42 = tpu.concatenate %35, %11, %41 in 1 : vector<32x128xf32>, vector<32x128xf32>, vector<32x128xf32> -> vector<32x384xf32>
    %43 = arith.truncf %42 : vector<32x384xf32> to vector<32x384xbf16>
    %c0_17 = arith.constant 0 : index
    %c0_18 = arith.constant 0 : index
    %44 = vector.load %arg6[%c0_17, %c0_18] : memref<384x256xbf16, #tpu.memory_space<vmem>>, vector<384x256xbf16>
    %cst_19 = arith.constant dense<0.000000e+00> : vector<32x256xf32>
    %45 = tpu.matmul %43, %44, %cst_19 {dimension_numbers = #tpu.dot_dimension_numbers<[1], [0], [0], [1], [0, 0, 1, 1], [], []>} : vector<32x384xbf16>, vector<384x256xbf16>, vector<32x256xf32> -> vector<32x256xf32>
    %c0_20 = arith.constant 0 : index
    %c0_21 = arith.constant 0 : index
    %46 = vector.load %arg7[%c0_20, %c0_21] : memref<1x256xf32, #tpu.memory_space<vmem>>, vector<1x256xf32>
    %47 = vector.broadcast %46 : vector<1x256xf32> to vector<32x256xf32>
    %48 = arith.addf %45, %47 : vector<32x256xf32>
    %cst_22 = arith.constant 0.000000e+00 : f32
    %49 = vector.broadcast %cst_22 : f32 to vector<32x256xf32>
    %50 = arith.cmpf ogt, %48, %49 : vector<32x256xf32>
    %cst_23 = arith.constant 0.00999999977 : f32
    %51 = vector.broadcast %cst_23 : f32 to vector<32x256xf32>
    %52 = arith.mulf %51, %48 : vector<32x256xf32>
    %53 = arith.select %50, %48, %52 : vector<32x256xi1>, vector<32x256xf32>
    %54 = tpu.iota {dimensions = array<i32: 0>} : vector<32x256xi32>
    %c16_i32_24 = arith.constant 16 : i32
    %c0_i32_25 = arith.constant 0 : i32
    %55 = arith.cmpi eq, %c16_i32_24, %c0_i32_25 : i32
    %c1_i32_26 = arith.constant 1 : i32
    %56 = arith.select %55, %c1_i32_26, %c16_i32_24 : i32
    %57 = vector.broadcast %56 : i32 to vector<32x256xi32>
    %58 = arith.remsi %54, %57 : vector<32x256xi32>
    %c0_i32_27 = arith.constant 0 : i32
    %59 = vector.broadcast %c0_i32_27 : i32 to vector<32x256xi32>
    %60 = arith.cmpi ne, %58, %59 : vector<32x256xi32>
    %c0_i32_28 = arith.constant 0 : i32
    %61 = vector.broadcast %c0_i32_28 : i32 to vector<32x256xi32>
    %62 = arith.cmpi slt, %58, %61 : vector<32x256xi32>
    %c0_i32_29 = arith.constant 0 : i32
    %63 = arith.cmpi slt, %56, %c0_i32_29 : i32
    %64 = vector.broadcast %63 : i1 to vector<32x256xi1>
    %65 = vector.broadcast %64 : vector<32x256xi1> to vector<32x256xi1>
    %66 = arith.xori %62, %65 : vector<32x256xi1>
    %67 = arith.andi %66, %60 : vector<32x256xi1>
    %68 = vector.broadcast %56 : i32 to vector<32x256xi32>
    %69 = arith.addi %58, %68 : vector<32x256xi32>
    %70 = arith.select %67, %69, %58 : vector<32x256xi1>, vector<32x256xi32>
    %cst_30 = arith.constant 0.000000e+00 : f32
    %71 = vector.broadcast %cst_30 : f32 to vector<1x256xf32>
    %c0_i32_31 = arith.constant 0 : i32
    %72 = vector.broadcast %c0_i32_31 : i32 to vector<32x256xi32>
    %73 = arith.cmpi eq, %70, %72 : vector<32x256xi32>
    %cst_32 = arith.constant 0.000000e+00 : f32
    %74 = vector.broadcast %cst_32 : f32 to vector<32x256xf32>
    %75 = vector.extract_strided_slice %53 {offsets = [0, 0], sizes = [31, 256], strides = [1, 1]} : vector<32x256xf32> to vector<31x256xf32>
    %76 = tpu.concatenate %71, %75 in 0 : vector<1x256xf32>, vector<31x256xf32> -> vector<32x256xf32>
    %77 = arith.select %73, %74, %76 : vector<32x256xi1>, vector<32x256xf32>
    %c15_i32_33 = arith.constant 15 : i32
    %78 = vector.broadcast %c15_i32_33 : i32 to vector<32x256xi32>
    %79 = arith.cmpi eq, %70, %78 : vector<32x256xi32>
    %cst_34 = arith.constant 0.000000e+00 : f32
    %80 = vector.broadcast %cst_34 : f32 to vector<32x256xf32>
    %81 = vector.extract_strided_slice %53 {offsets = [1, 0], sizes = [31, 256], strides = [1, 1]} : vector<32x256xf32> to vector<31x256xf32>
    %82 = tpu.concatenate %81, %71 in 0 : vector<31x256xf32>, vector<1x256xf32> -> vector<32x256xf32>
    %83 = arith.select %79, %80, %82 : vector<32x256xi1>, vector<32x256xf32>
    %84 = tpu.concatenate %77, %53, %83 in 1 : vector<32x256xf32>, vector<32x256xf32>, vector<32x256xf32> -> vector<32x768xf32>
    %85 = arith.truncf %84 : vector<32x768xf32> to vector<32x768xbf16>
    %c0_35 = arith.constant 0 : index
    %c0_36 = arith.constant 0 : index
    %86 = vector.load %arg8[%c0_35, %c0_36] : memref<768x256xbf16, #tpu.memory_space<vmem>>, vector<768x256xbf16>
    %cst_37 = arith.constant dense<0.000000e+00> : vector<32x256xf32>
    %87 = tpu.matmul %85, %86, %cst_37 {dimension_numbers = #tpu.dot_dimension_numbers<[1], [0], [0], [1], [0, 0, 1, 1], [], []>} : vector<32x768xbf16>, vector<768x256xbf16>, vector<32x256xf32> -> vector<32x256xf32>
    %c0_38 = arith.constant 0 : index
    %c0_39 = arith.constant 0 : index
    %88 = vector.load %arg9[%c0_38, %c0_39] : memref<1x256xf32, #tpu.memory_space<vmem>>, vector<1x256xf32>
    %89 = vector.broadcast %88 : vector<1x256xf32> to vector<32x256xf32>
    %90 = arith.addf %87, %89 : vector<32x256xf32>
    %cst_40 = arith.constant 0.000000e+00 : f32
    %91 = vector.broadcast %cst_40 : f32 to vector<32x256xf32>
    %92 = arith.cmpf ogt, %90, %91 : vector<32x256xf32>
    %cst_41 = arith.constant 0.00999999977 : f32
    %93 = vector.broadcast %cst_41 : f32 to vector<32x256xf32>
    %94 = arith.mulf %93, %90 : vector<32x256xf32>
    %95 = arith.select %92, %90, %94 : vector<32x256xi1>, vector<32x256xf32>
    %c0_42 = arith.constant 0 : index
    %c0_43 = arith.constant 0 : index
    %96 = vector.load %arg10[%c0_42, %c0_43] : memref<32x256xf32, #tpu.memory_space<vmem>>, vector<32x256xf32>
    tpu.vector_store %arg10[%c0_42, %c0_43], %95 {strides = array<i32>} : memref<32x256xf32, #tpu.memory_space<vmem>>, vector<32x256xf32>,
    return
  }
  func.func @transform_0(%arg0: i32) -> (i32, i32) {
    %c0_i32 = arith.constant 0 : i32
    %c0_i32_0 = arith.constant 0 : i32
    return %arg0, %c0_i32 : i32, i32
  }
  func.func @transform_1(%arg0: i32) -> (i32, i32) {
    %c0_i32 = arith.constant 0 : i32
    %c0_i32_0 = arith.constant 0 : i32
    return %arg0, %c0_i32 : i32, i32
  }
  func.func @transform_2(%arg0: i32) -> (i32, i32) {
    %c0_i32 = arith.constant 0 : i32
    %c0_i32_0 = arith.constant 0 : i32
    %c0_i32_1 = arith.constant 0 : i32
    return %c0_i32, %c0_i32_0 : i32, i32
  }
  func.func @transform_3(%arg0: i32) -> (i32, i32) {
    %c0_i32 = arith.constant 0 : i32
    %c0_i32_0 = arith.constant 0 : i32
    %c0_i32_1 = arith.constant 0 : i32
    return %c0_i32, %c0_i32_0 : i32, i32
  }
  func.func @transform_4(%arg0: i32) -> (i32, i32) {
    %c0_i32 = arith.constant 0 : i32
    %c0_i32_0 = arith.constant 0 : i32
    %c0_i32_1 = arith.constant 0 : i32
    return %c0_i32, %c0_i32_0 : i32, i32
  }
  func.func @transform_5(%arg0: i32) -> (i32, i32) {
    %c0_i32 = arith.constant 0 : i32
    %c0_i32_0 = arith.constant 0 : i32
    %c0_i32_1 = arith.constant 0 : i32
    return %c0_i32, %c0_i32_0 : i32, i32
  }
  func.func @transform_6(%arg0: i32) -> (i32, i32) {
    %c0_i32 = arith.constant 0 : i32
    %c0_i32_0 = arith.constant 0 : i32
    %c0_i32_1 = arith.constant 0 : i32
    return %c0_i32, %c0_i32_0 : i32, i32
  }
  func.func @transform_7(%arg0: i32) -> (i32, i32) {
    %c0_i32 = arith.constant 0 : i32
    %c0_i32_0 = arith.constant 0 : i32
    %c0_i32_1 = arith.constant 0 : i32
    return %c0_i32, %c0_i32_0 : i32, i32
  }
  func.func @transform_8(%arg0: i32) -> (i32, i32) {
    %c0_i32 = arith.constant 0 : i32
    %c0_i32_0 = arith.constant 0 : i32
    %c0_i32_1 = arith.constant 0 : i32
    return %c0_i32, %c0_i32_0 : i32, i32
  }
  func.func @transform_9(%arg0: i32) -> (i32, i32) {
    %c0_i32 = arith.constant 0 : i32
    %c0_i32_0 = arith.constant 0 : i32
    return %arg0, %c0_i32 : i32, i32
  }
}

</mosaic_0001>

<bundles_post_ra>
// kernel: upblock_forward.1
= control target key start
LH: loop header
LB: loop body
LE: loop exit
PB: predicated region body
PF: predicated region fallthrough
CT: control target
= control target key end

     0   :  { %v2078_v0 = vmov 0.0   ;;  %vm2079_vm0 = vmmov 0   ;;  %vm79_vm1 = vcmask 523264   ;;  %vm139_vm2 = vcmask 130048   ;;  %s2768_s2 = inlined_call_operand.vmem [shape: bf16[64,128], index: 2, kind: input, shape index: {}]   ;;  %s2769_s0 = inlined_call_operand.vmem [shape: bf16[16,64], index: 0, kind: input, shape index: {}]   ;;  %s2770_s3 = inlined_call_operand.vmem [shape: bf16[32,16], index: 3, kind: input, shape index: {}]   ;;  %s2771_s5 = inlined_call_operand.vmem [shape: bf16[384,256], index: 5, kind: input, shape index: {}]   ;;  %s2772_s4 = inlined_call_operand.vmem [shape: f32[1,128], index: 4, kind: input, shape index: {}]   ;;  %s2773_s7 = inlined_call_operand.vmem [shape: bf16[768,256], index: 7, kind: input, shape index: {}]   ;;  %s2774_s1 = inlined_call_operand.vmem [shape: bf16[32,128], index: 1, kind: input, shape index: {}]   ;;  %s2775_s6 = inlined_call_operand.vmem [shape: f32[1,256], index: 6, kind: input, shape index: {}]   ;;  %s2776_s8 = inlined_call_operand.vmem [shape: f32[1,256], index: 8, kind: input, shape index: {}]   ;;  %s2777_s9 = inlined_call_operand.vmem [shape: f32[32,256], index: 9, kind: output, shape index: {}]  }
   0x1   :  { %1833 = vmatprep.subr.bf16.mxu1 %v2078_v0  ;;  %v1855_v1 = vld [vmem:[%s2768_s2 + $0x18] sm:$0xff]   ;;  %1841 = vmatprep.mubr.msk.bf16.mxu1 %vm2079_vm0, %v2078_v0  ;;  %v1856_v2 = vld [vmem:[%s2768_s2 + $0x10] sm:$0xff]   ;;  %v1857_v3 = vld [vmem:[%s2768_s2 + $0x8] sm:$0xff]   ;;  %vm268_vm3 = vcmask 1040384   ;;  %vm289_vm6 = vcmask 1046528   ;;  %vm2081_vm7 = vmmov 1  }
   0x2   :  { %1834 = vmatpush3.bf16.msra.mxu1 %v1855_v1  ;;  %v1858_v4 = vld [vmem:[%s2768_s2] sm:$0xff]   ;;  %v1889_v7 = vld [vmem:[%s2771_s5 + $0x174] ss:$8 sps:$4 sm:$0xff]   ;;  %v1891_v8 = vld [vmem:[%s2771_s5 + $0x170] ss:$8 sps:$4 sm:$0xff]  }
   0x3   :  { %1835 = vmatprep.subr.bf16.mxu1 %v2078_v0  ;;  %v1859_v5 = vld [vmem:[%s2769_s0] sm:$0xff]   ;;  %665 = vmatprep.subr.bf16.mxu0 %v1889_v7  ;;  %v1901_v11 = vld [vmem:[%s2771_s5 + $0x154] ss:$8 sps:$4 sm:$0xff]   ;;  %v1903_v12 = vld [vmem:[%s2771_s5 + $0x150] ss:$8 sps:$4 sm:$0xff]  }
   0x4   :  { %v1860_v6 = vld [vmem:[%s2770_s3] sm:$0xff]   ;;  %666 = vmatpush1.bf16.msra.mxu0 %v1891_v8  ;;  %v1913_v15 = vld [vmem:[%s2771_s5 + $0x134] ss:$8 sps:$4 sm:$0xff]   ;;  %v1915_v16 = vld [vmem:[%s2771_s5 + $0x130] ss:$8 sps:$4 sm:$0xff]  }
   0x5   :  { %v1895_v9 = vld [vmem:[%s2771_s5 + $0x164] ss:$8 sps:$4 sm:$0xff]   ;;  %v1897_v10 = vld [vmem:[%s2771_s5 + $0x160] ss:$8 sps:$4 sm:$0xff]   ;;  %v1864_v25 = vld [vmem:[%s2771_s5 + $0x74] ss:$8 sps:$4 sm:$0xff]  }
   0x6   :  { %1836 = vmatpush3.bf16.msra.mxu1 %v1856_v2  ;;  %667 = vmatprep.subr.bf16.mxu0 %v1895_v9  ;;  %v1907_v13 = vld [vmem:[%s2771_s5 + $0x144] ss:$8 sps:$4 sm:$0xff]   ;;  %v1909_v14 = vld [vmem:[%s2771_s5 + $0x140] ss:$8 sps:$4 sm:$0xff]   ;;  %v1862_v27 = vld [vmem:[%s2771_s5 + $0x70] ss:$8 sps:$4 sm:$0xff]  }
   0x7   :  { %1837 = vmatprep.subr.bf16.mxu1 %v2078_v0  ;;  %v1609_v18 = vld [vmem:[%s2772_s4] ss:$0 sm:$0xff]  ;;  %v1861_v26 = vld [vmem:[%s2770_s3 + $0x8] sm:$0xff]   ;;  %v1870_v30 = vld [vmem:[%s2771_s5 + $0x54] ss:$8 sps:$4 sm:$0xff]  }
   0x8   :  { %668 = vmatpush1.bf16.msra.mxu0 %v1897_v10  ;;  %v1867_v28 = vld [vmem:[%s2771_s5 + $0x64] ss:$8 sps:$4 sm:$0xff]   ;;  %v1865_v29 = vld [vmem:[%s2771_s5 + $0x60] ss:$8 sps:$4 sm:$0xff]   ;;  %v1868_v31 = vld [vmem:[%s2771_s5 + $0x50] ss:$8 sps:$4 sm:$0xff]  }
   0x9   :  { %669 = vmatprep.subr.bf16.mxu0 %v1901_v11  ;;  %v1873_v32 = vld [vmem:[%s2771_s5 + $0x44] ss:$8 sps:$4 sm:$0xff]   ;;  %v1871_v33 = vld [vmem:[%s2771_s5 + $0x40] ss:$8 sps:$4 sm:$0xff]   ;;  %v1876_v34 = vld [vmem:[%s2771_s5 + $0x34] ss:$8 sps:$4 sm:$0xff]  }
   0xa   :  { %1838 = vmatpush3.bf16.msra.mxu1 %v1857_v3  ;;  %v1874_v35 = vld [vmem:[%s2771_s5 + $0x30] ss:$8 sps:$4 sm:$0xff]   ;;  %v1879_v36 = vld [vmem:[%s2771_s5 + $0x24] ss:$8 sps:$4 sm:$0xff]   ;;  %v1877_v37 = vld [vmem:[%s2771_s5 + $0x20] ss:$8 sps:$4 sm:$0xff]   ;;  %v207_v3 = vlaneseq }
   0xb   :  { %1839 = vmatprep.subr.bf16.mxu1 %v2078_v0  ;;  %v1882_v38 = vld [vmem:[%s2771_s5 + $0x14] ss:$8 sps:$4 sm:$0xff]   ;;  %v1880_v39 = vld [vmem:[%s2771_s5 + $0x10] ss:$8 sps:$4 sm:$0xff]   ;;  %v1885_v40 = vld [vmem:[%s2771_s5 + $0x4] ss:$8 sps:$4 sm:$0xff]  }
   0xc   :  { %670 = vmatpush1.bf16.msra.mxu0 %v1903_v12  ;;  %v1883_v41 = vld [vmem:[%s2771_s5] ss:$8 sps:$4 sm:$0xff]   ;;  %v1888_v42 = vld [vmem:[%s2771_s5 + $0xf4] ss:$8 sps:$4 sm:$0xff]   ;;  %v1886_v43 = vld [vmem:[%s2771_s5 + $0xf0] ss:$8 sps:$4 sm:$0xff]  }
   0xd   :  { %671 = vmatprep.subr.bf16.mxu0 %v1907_v13  ;;  %v1894_v44 = vld [vmem:[%s2771_s5 + $0xe4] ss:$8 sps:$4 sm:$0xff]   ;;  %v1892_v45 = vld [vmem:[%s2771_s5 + $0xe0] ss:$8 sps:$4 sm:$0xff]   ;;  %v1900_v46 = vld [vmem:[%s2771_s5 + $0xd4] ss:$8 sps:$4 sm:$0xff]  }
   0xe   :  { %1840 = vmatpush3.bf16.msra.mxu1 %v1858_v4  ;;  %v1898_v47 = vld [vmem:[%s2771_s5 + $0xd0] ss:$8 sps:$4 sm:$0xff]   ;;  %v1906_v48 = vld [vmem:[%s2771_s5 + $0xc4] ss:$8 sps:$4 sm:$0xff]   ;;  %v1904_v49 = vld [vmem:[%s2771_s5 + $0xc0] ss:$8 sps:$4 sm:$0xff]  }
   0xf   :  { %v1912_v50 = vld [vmem:[%s2771_s5 + $0xb4] ss:$8 sps:$4 sm:$0xff]   ;;  %v1910_v51 = vld [vmem:[%s2771_s5 + $0xb0] ss:$8 sps:$4 sm:$0xff]   ;;  %v1918_v52 = vld [vmem:[%s2771_s5 + $0xa4] ss:$8 sps:$4 sm:$0xff]  }
  0x10   :  { %672 = vmatpush1.bf16.msra.mxu0 %v1909_v14  ;;  %v1919_v53 = vld [vmem:[%s2771_s5 + $0x124] ss:$8 sps:$4 sm:$0xff]   ;;  %v1916_v54 = vld [vmem:[%s2771_s5 + $0xa0] ss:$8 sps:$4 sm:$0xff]   ;;  %v1924_v56 = vld [vmem:[%s2771_s5 + $0x94] ss:$8 sps:$4 sm:$0xff]  }
  0x11   :  { %1842 = vmatmul.mubr.msk.bf16.vlgmr.msra.gmra.mxu1 %vm79_vm1, %v1859_v5  ;;  %673 = vmatprep.subr.bf16.mxu0 %v1913_v15  ;;  %v1921_v55 = vld [vmem:[%s2771_s5 + $0x120] ss:$8 sps:$4 sm:$0xff]   ;;  %v1925_v57 = vld [vmem:[%s2771_s5 + $0x114] ss:$8 sps:$4 sm:$0xff]   ;;  %v1922_v58 = vld [vmem:[%s2771_s5 + $0x90] ss:$8 sps:$4 sm:$0xff]  }
  0x12   :  { %1847 = vmatprep.mubr.msk.bf16.mxu1 %vm139_vm2, %v1860_v6  ;;  %v1927_v59 = vld [vmem:[%s2771_s5 + $0x110] ss:$8 sps:$4 sm:$0xff]   ;;  %v1930_v60 = vld [vmem:[%s2771_s5 + $0x84] ss:$8 sps:$4 sm:$0xff]   ;;  %v1928_v62 = vld [vmem:[%s2771_s5 + $0x80] ss:$8 sps:$4 sm:$0xff]  }
  0x13   :  { %v1931_v61 = vld [vmem:[%s2771_s5 + $0x104] ss:$8 sps:$4 sm:$0xff]   ;;  %v1933_v63 = vld [vmem:[%s2771_s5 + $0x100] ss:$8 sps:$4 sm:$0xff]   ;;  %v2080_v0 = vmov 0   ;;  %v2311_v5 = vshrl.u32 %v207_v3, 7 }
  0x14   :  { %674 = vmatpush1.bf16.msra.mxu0 %v1915_v16  ;;  %697 = vmatprep.mubr.bf16.mxu0 %v2080_v0  ;;  %v1936_v1 = vld [vmem:[%s2773_s7 + $0x174] ss:$8 sps:$4 sm:$0xff]   ;;  %v1813_v4 = vld [vmem:[%s2774_s1] sm:$0xff]   ;;  %v1820_v6 = vld [vmem:[%s2774_s1 + $0x8] sm:$0xff]  }
  0x15   :  { %675 = vmatprep.subr.bf16.mxu0 %v1919_v53  ;;  %v1939_v2 = vld [vmem:[%s2773_s7 + $0x74] ss:$8 sps:$4 sm:$0xff]   ;;  %v1814_v7 = vunpack.c.l.bf16 %v1813_v4  ;;  %v1818_v9 = vunpack.c.l.bf16 %v1820_v6  ;;  %v209_v10 = vadd.s32 8, %v2311_v5  ;;  %v1815_v13 = vunpack.c.h.bf16 %v1813_v4 }
  0x16   :  { %v216_v14 = vand.u32 15, %v2311_v5  ;;  %v1960_v3 = vld [vmem:[%s2773_s7 + $0x134] ss:$8 sps:$4 sm:$0xff]  }
  0x17   :  { %v1963_v4 = vld [vmem:[%s2773_s7 + $0x34] ss:$8 sps:$4 sm:$0xff]  }
  0x18   :  { %676 = vmatpush1.bf16.msra.mxu0 %v1921_v55  ;;  %vm1821_vm4 = vcmp.ne.s32.totalorder %v216_v14, 0  ;;  %v1951_v55 = vld [vmem:[%s2773_s7 + $0x54] ss:$8 sps:$4 sm:$0xff]   ;;  %v1970_v14 = vld [vmem:[%s2773_s7 + $0x110] ss:$8 sps:$4 sm:$0xff]  }
  0x19   :  { %677 = vmatprep.subr.bf16.mxu0 %v1925_v57  ;;  %vm2325_vm8 = vmpackc.low %vm2081_vm7, %vm1821_vm4 }
  0x1c   :  { %678 = vmatpush1.bf16.msra.mxu0 %v1927_v59 }
  0x1d   :  { %679 = vmatprep.subr.bf16.mxu0 %v1931_v61  ;;  %v1946_v61 = vld [vmem:[%s2773_s7 + $0x150] ss:$8 sps:$4 sm:$0xff]  }
  0x20   :  { %680 = vmatpush1.bf16.msra.mxu0 %v1933_v63  ;;  %v1954_v63 = vld [vmem:[%s2773_s7 + $0x144] ss:$8 sps:$4 sm:$0xff]  }
  0x21   :  { %1414 = vmatprep.subr.bf16.mxu0 %v1939_v2  ;;  %v1955_v2 = vld [vmem:[%s2773_s7 + $0x40] ss:$8 sps:$4 sm:$0xff]  }
  0xd1   :  { %v117_v17 = vpop.f32.mrf.mxu1 }
  0xd2   :  { %v118_v21 = vadd.f32 %v1609_v18, %v117_v17  ;;  %v223_v17 = vand.u32 15, %v209_v10  ;;  %v1964_v10 = vld [vmem:[%s2773_s7 + $0x120] ss:$8 sps:$4 sm:$0xff]  }
  0xd3   :  { %v1843_v19 = vpop.f32.mrf.mxu1 }
  0xd4   :  { %vm2319_vm5 = vcmp.ne.s32.totalorder %v223_v17, 15  ;;  %v1981_v17 = vld [vmem:[%s2773_s7 + $0x4] ss:$8 sps:$4 sm:$0xff]  }
  0xd5   :  { %v120_v20 = vpop.f32.mrf.mxu1  ;;  %vm2336_vm9 = vmpackc.low %vm2319_vm5, %vm2081_vm7 }
  0xd6   :  { %v121_v22 = vadd.f32 %v1609_v18, %v120_v20  ;;  %v1819_v18 = vunpack.c.h.bf16 %v1820_v6  ;;  %v210_v20 = vadd.s32 16, %v2311_v5  ;;  %v1958_v6 = vld [vmem:[%s2773_s7 + $0x130] ss:$8 sps:$4 sm:$0xff]  }
  0xd7   :  { %v1844_v23 = vpop.f32.mrf.mxu1 }
  0xd8   :  { %v128_v24 = vpack.c.bf16 %v121_v22, %v118_v21 }
  0xda   :  { %1845 = vmatprep.subr.bf16.mxu1 %v128_v24 }
  0xdb   :  { %1846 = vmatpush3.bf16.msra.mxu1 %v128_v24 }
  0xdc   :  { %612 = vmatprep.subr.bf16.mxu1 %v1864_v25  ;;  %v1993_v25 = vld [vmem:[%s2773_s7 + $0xe4] ss:$8 sps:$4 sm:$0xff]  }
  0xde   :  { %1848 = vmatmul.mubr.msk.bf16.vlgmr.msra.gmra.mxu1 %vm139_vm2, %v1861_v26  ;;  %v211_v26 = vadd.s32 24, %v2311_v5 }
  0xdf   :  { %613 = vmatpush1.bf16.msra.mxu1 %v1862_v27 }
  0xe0   :  { %614 = vmatprep.subr.bf16.mxu1 %v1867_v28 }
  0xe3   :  { %615 = vmatpush1.bf16.msra.mxu1 %v1865_v29 }
  0xe4   :  { %616 = vmatprep.subr.bf16.mxu1 %v1870_v30 }
  0xe7   :  { %617 = vmatpush1.bf16.msra.mxu1 %v1868_v31  ;;  %v2038_v31 = vld [vmem:[%s2773_s7 + $0x254] ss:$8 sps:$4 sm:$0xff]  }
  0xe8   :  { %618 = vmatprep.subr.bf16.mxu1 %v1873_v32  ;;  %v230_v32 = vand.u32 15, %v210_v20  ;;  %v1984_v20 = vld [vmem:[%s2773_s7 + $0x1f4] ss:$8 sps:$4 sm:$0xff]  }
  0xea   :  { %vm1822_vm10 = vcmp.ne.s32.totalorder %v230_v32, 0  ;;  %v1997_v32 = vld [vmem:[%s2773_s7 + $0xd0] ss:$8 sps:$4 sm:$0xff]  }
  0xeb   :  { %619 = vmatpush1.bf16.msra.mxu1 %v1871_v33  ;;  %vm2372_vm12 = vmpackc.low %vm2081_vm7, %vm1822_vm10 }
  0xec   :  { %620 = vmatprep.subr.bf16.mxu1 %v1876_v34 }
  0xef   :  { %621 = vmatpush1.bf16.msra.mxu1 %v1874_v35 }
  0xf0   :  { %622 = vmatprep.subr.bf16.mxu1 %v1879_v36 }
  0xf3   :  { %623 = vmatpush1.bf16.msra.mxu1 %v1877_v37 }
  0xf4   :  { %624 = vmatprep.subr.bf16.mxu1 %v1882_v38 }
  0xf7   :  { %625 = vmatpush1.bf16.msra.mxu1 %v1880_v39 }
  0xf8   :  { %626 = vmatprep.subr.bf16.mxu1 %v1885_v40  ;;  %v237_v40 = vand.u32 15, %v211_v26  ;;  %v1988_v26 = vld [vmem:[%s2773_s7 + $0x1e0] ss:$8 sps:$4 sm:$0xff]  }
  0xfa   :  { %vm1824_vm11 = vcmp.ne.s32.totalorder %v237_v40, 15  ;;  %v2011_v40 = vld [vmem:[%s2773_s7 + $0xb4] ss:$8 sps:$4 sm:$0xff]  }
  0xfb   :  { %627 = vmatpush1.bf16.msra.mxu1 %v1883_v41  ;;  %v1934_v41 = vld [vmem:[%s2773_s7 + $0x170] ss:$8 sps:$4 sm:$0xff]   ;;  %vm2378_vm13 = vmpackc.low %vm1824_vm11, %vm2081_vm7 }
  0xfc   :  { %628 = vmatprep.subr.bf16.mxu1 %v1888_v42  ;;  %v1937_v42 = vld [vmem:[%s2773_s7 + $0x70] ss:$8 sps:$4 sm:$0xff]  }
  0xff   :  { %629 = vmatpush2.bf16.msra.mxu1 %v1886_v43 }
 0x100   :  { %630 = vmatprep.subr.bf16.mxu1 %v1894_v44 }
 0x103   :  { %631 = vmatpush2.bf16.msra.mxu1 %v1892_v45  ;;  %v1942_v45 = vld [vmem:[%s2773_s7 + $0x164] ss:$8 sps:$4 sm:$0xff]  }
 0x104   :  { %632 = vmatprep.subr.bf16.mxu1 %v1900_v46  ;;  %v1945_v46 = vld [vmem:[%s2773_s7 + $0x64] ss:$8 sps:$4 sm:$0xff]  }
 0x107   :  { %633 = vmatpush2.bf16.msra.mxu1 %v1898_v47 }
 0x108   :  { %634 = vmatprep.subr.bf16.mxu1 %v1906_v48 }
 0x10b   :  { %635 = vmatpush2.bf16.msra.mxu1 %v1904_v49  ;;  %v1940_v49 = vld [vmem:[%s2773_s7 + $0x160] ss:$8 sps:$4 sm:$0xff]  }
 0x10c   :  { %636 = vmatprep.subr.bf16.mxu1 %v1912_v50  ;;  %v1943_v50 = vld [vmem:[%s2773_s7 + $0x60] ss:$8 sps:$4 sm:$0xff]  }
 0x10f   :  { %637 = vmatpush2.bf16.msra.mxu1 %v1910_v51 }
 0x110   :  { %638 = vmatprep.subr.bf16.mxu1 %v1918_v52 }
 0x113   :  { %639 = vmatpush2.bf16.msra.mxu1 %v1916_v54  ;;  %v1948_v54 = vld [vmem:[%s2773_s7 + $0x154] ss:$8 sps:$4 sm:$0xff]  }
 0x114   :  { %640 = vmatprep.subr.bf16.mxu1 %v1924_v56  ;;  %v2047_v56 = vld [vmem:[%s2773_s7 + $0x224] ss:$8 sps:$4 sm:$0xff]  }
 0x117   :  { %641 = vmatpush2.bf16.msra.mxu1 %v1922_v58 }
 0x118   :  { %642 = vmatprep.subr.bf16.mxu1 %v1930_v60 }
 0x11b   :  { %643 = vmatpush2.bf16.msra.mxu1 %v1928_v62  ;;  %v1949_v62 = vld [vmem:[%s2773_s7 + $0x50] ss:$8 sps:$4 sm:$0xff]  }
 0x11c   :  { %1467 = vmatprep.subr.bf16.mxu1 %v1936_v1  ;;  %v1952_v1 = vld [vmem:[%s2773_s7 + $0x140] ss:$8 sps:$4 sm:$0xff]  }
 0x19e   :  { %v1849_v8 = vpop.f32.mrf.mxu1 }
 0x19f   :  { %v205_v15 = vadd.f32 %v1849_v8, %v1818_v9  ;;  %v1966_v8 = vld [vmem:[%s2773_s7 + $0x124] ss:$8 sps:$4 sm:$0xff]  }
 0x1a0   :  { %v180_v11 = vpop.f32.mrf.mxu1  ;;  %v1969_v9 = vld [vmem:[%s2773_s7 + $0x24] ss:$8 sps:$4 sm:$0xff]  }
 0x1a1   :  { %v203_v12 = vadd.f32 %v1814_v7, %v180_v11  ;;  %v293_v23 = vrot.slane %v205_v15, 1  ;;  %v272_v47 = vrot.slane %v205_v15, 7  ;;  %v1961_v7 = vld [vmem:[%s2773_s7 + $0x30] ss:$8 sps:$4 sm:$0xff]   ;;  %v1967_v11 = vld [vmem:[%s2773_s7 + $0x20] ss:$8 sps:$4 sm:$0xff]  }
 0x1a2   :  { %v1850_v16 = vpop.f32.mrf.mxu1 }
 0x1a3   :  { %v269_v21 = vrot.slane %v203_v12, 7  ;;  %v290_v24 = vrot.slane %v203_v12, 1  ;;  %v206_v27 = vadd.f32 %v1850_v16, %v1819_v18  ;;  %v1978_v16 = vld [vmem:[%s2773_s7 + $0x104] ss:$8 sps:$4 sm:$0xff]   ;;  %v1976_v18 = vld [vmem:[%s2773_s7 + $0x100] ss:$8 sps:$4 sm:$0xff]  }
 0x1a4   :  { %v183_v19 = vpop.f32.mrf.mxu1 }
 0x1a5   :  { %v204_v22 = vadd.f32 %v1815_v13, %v183_v19  ;;  %v280_v33 = vsel %vm268_vm3, 0.0, %v269_v21  ;;  %v295_v43 = vrot.slane %v206_v27, 1  ;;  %v310_v44 = vpack.c.bf16 %v206_v27, %v205_v15  ;;  %v1975_v13 = vld [vmem:[%s2773_s7 + $0x14] ss:$8 sps:$4 sm:$0xff]   ;;  %v1973_v15 = vld [vmem:[%s2773_s7 + $0x10] ss:$8 sps:$4 sm:$0xff]  }
 0x1a6   :  { %v274_v48 = vrot.slane %v206_v27, 7  ;;  %v1979_v19 = vld [vmem:[%s2773_s7] ss:$8 sps:$4 sm:$0xff]  }
 0x1a7   :  { %v270_v28 = vrot.slane %v204_v22, 7  ;;  %v291_v29 = vrot.slane %v204_v22, 1  ;;  %v307_v30 = vpack.c.bf16 %v204_v22, %v203_v12  ;;  %v301_v51 = vsel %vm289_vm6, %v295_v43, 0.0  ;;  %v1972_v12 = vld [vmem:[%s2773_s7 + $0x114] ss:$8 sps:$4 sm:$0xff]  }
 0x1a8   :  { %v296_v53 = vsel %vm289_vm6, %v293_v23, %v295_v43  ;;  %v275_v57 = vsel %vm268_vm3, %v272_v47, %v274_v48  ;;  %v1982_v22 = vld [vmem:[%s2773_s7 + $0x1f0] ss:$8 sps:$4 sm:$0xff]   ;;  %v1991_v27 = vld [vmem:[%s2773_s7 + $0xe0] ss:$8 sps:$4 sm:$0xff]   ;;  %v2023_v48 = vld [vmem:[%s2773_s7 + $0x94] ss:$8 sps:$4 sm:$0xff]  }
 0x1a9   :  { %v271_v34 = vsel %vm268_vm3, %v269_v21, %v270_v28  ;;  %644 = vmatprep.mubr.bf16.mxu1 %v307_v30  ;;  %v292_v35 = vsel %vm289_vm6, %v290_v24, %v291_v29  ;;  %v294_v36 = vsel %vm289_vm6, %v291_v29, %v293_v23  ;;  %v273_v52 = vsel %vm268_vm3, %v270_v28, %v272_v47  ;;  %v1987_v21 = vld [vmem:[%s2773_s7 + $0xf4] ss:$8 sps:$4 sm:$0xff]   ;;  %v1985_v23 = vld [vmem:[%s2773_s7 + $0xf0] ss:$8 sps:$4 sm:$0xff]   ;;  %v1990_v24 = vld [vmem:[%s2773_s7 + $0x1e4] ss:$8 sps:$4 sm:$0xff]  }
 0x1aa   :  { %v1670_v38 = vpack.c.bf16 %v271_v34, %v280_v33  ;;  %v1678_v39 = vpack.c.bf16 %v294_v36, %v292_v35  ;;  %v1674_v59 = vpack.c.bf16 %v275_v57, %v273_v52  ;;  %v1682_v60 = vpack.c.bf16 %v301_v51, %v296_v53  ;;  %v1996_v28 = vld [vmem:[%s2773_s7 + $0x1d4] ss:$8 sps:$4 sm:$0xff]   ;;  %v1994_v30 = vld [vmem:[%s2773_s7 + $0x1d0] ss:$8 sps:$4 sm:$0xff]   ;;  %v2002_v33 = vld [vmem:[%s2773_s7 + $0x1c4] ss:$8 sps:$4 sm:$0xff]  }
 0x1ab   :  { %v1999_v29 = vld [vmem:[%s2773_s7 + $0xd4] ss:$8 sps:$4 sm:$0xff]   ;;  %v2005_v34 = vld [vmem:[%s2773_s7 + $0xc4] ss:$8 sps:$4 sm:$0xff]   ;;  %v2000_v35 = vld [vmem:[%s2773_s7 + $0x1c0] ss:$8 sps:$4 sm:$0xff]  }
 0x1ac   :  { %1671 = vmatmul.mubr.msk.bf16.vlgmr.msra.gmra.mxu1 %vm2325_vm8, %v1670_v38  ;;  %1679 = vmatmul.mubr.msk.bf16.vlgmr.msra.gmra.mxu0 %vm2336_vm9, %v1678_v39  ;;  %v2003_v36 = vld [vmem:[%s2773_s7 + $0xc0] ss:$8 sps:$4 sm:$0xff]   ;;  %v2008_v38 = vld [vmem:[%s2773_s7 + $0x1b4] ss:$8 sps:$4 sm:$0xff]   ;;  %v2006_v39 = vld [vmem:[%s2773_s7 + $0x1b0] ss:$8 sps:$4 sm:$0xff]  }
 0x1ad   :  { %654 = vmatprep.mubr.bf16.mxu1 %v310_v44  ;;  %707 = vmatprep.mubr.bf16.mxu0 %v2080_v0  ;;  %v1957_v0 = vld [vmem:[%s2773_s7 + $0x44] ss:$8 sps:$4 sm:$0xff]   ;;  %v2012_v43 = vld [vmem:[%s2773_s7 + $0x1a0] ss:$8 sps:$4 sm:$0xff]   ;;  %v2018_v47 = vld [vmem:[%s2773_s7 + $0x190] ss:$8 sps:$4 sm:$0xff]  }
 0x1ae   :  { %1468 = vmatpush1.bf16.msra.mxu1 %v1934_v41  ;;  %1415 = vmatpush1.bf16.msra.mxu0 %v1937_v42  ;;  %v2009_v41 = vld [vmem:[%s2773_s7 + $0xb0] ss:$8 sps:$4 sm:$0xff]   ;;  %v2014_v42 = vld [vmem:[%s2773_s7 + $0x1a4] ss:$8 sps:$4 sm:$0xff]   ;;  %v2024_v51 = vld [vmem:[%s2773_s7 + $0x180] ss:$8 sps:$4 sm:$0xff]  }
 0x1af   :  { %1469 = vmatprep.subr.bf16.mxu1 %v1942_v45  ;;  %1416 = vmatprep.subr.bf16.mxu0 %v1945_v46  ;;  %v2017_v44 = vld [vmem:[%s2773_s7 + $0xa4] ss:$8 sps:$4 sm:$0xff]   ;;  %v2015_v45 = vld [vmem:[%s2773_s7 + $0xa0] ss:$8 sps:$4 sm:$0xff]   ;;  %v2020_v46 = vld [vmem:[%s2773_s7 + $0x194] ss:$8 sps:$4 sm:$0xff]  }
 0x1b0   :  { %v2029_v52 = vld [vmem:[%s2773_s7 + $0x84] ss:$8 sps:$4 sm:$0xff]   ;;  %v2027_v53 = vld [vmem:[%s2773_s7 + $0x80] ss:$8 sps:$4 sm:$0xff]  }
 0x1b1   :  { %v360_v57 = vld [vmem:[%s2775_s6] sm:$0x3] }
 0x1b2   :  { %1470 = vmatpush1.bf16.msra.mxu1 %v1940_v49  ;;  %1417 = vmatpush1.bf16.msra.mxu0 %v1943_v50  ;;  %v2021_v49 = vld [vmem:[%s2773_s7 + $0x90] ss:$8 sps:$4 sm:$0xff]   ;;  %v2026_v50 = vld [vmem:[%s2773_s7 + $0x184] ss:$8 sps:$4 sm:$0xff]  }
 0x1b3   :  { %1471 = vmatprep.subr.bf16.mxu1 %v1948_v54  ;;  %1418 = vmatprep.subr.bf16.mxu0 %v1951_v55  ;;  %v2032_v54 = vld [vmem:[%s2773_s7 + $0x274] ss:$8 sps:$4 sm:$0xff]   ;;  %v364_v55 = vsub.s32 0, %v2311_v5 }
 0x1b4   :  { %1675 = vmatmul.mubr.msk.bf16.gmra.mxu1 %vm2372_vm12, %v1674_v59  ;;  %1683 = vmatmul.mubr.msk.bf16.gmra.mxu0 %vm2378_vm13, %v1682_v60  ;;  %v368_v59 = vsub.s32 1, %v2311_v5 }
 0x1b5   :  { %v365_v60 = vrot.slane %v360_v57, %v364_v55 }
 0x1b6   :  { %1472 = vmatpush1.bf16.msra.mxu1 %v1946_v61  ;;  %1419 = vmatpush1.bf16.msra.mxu0 %v1949_v62  ;;  %v369_v61 = vrot.slane %v360_v57, %v368_v59 }
 0x1b7   :  { %1473 = vmatprep.subr.bf16.mxu1 %v1954_v63  ;;  %1420 = vmatprep.subr.bf16.mxu0 %v1957_v0 }
 0x1ba   :  { %1474 = vmatpush1.bf16.msra.mxu1 %v1952_v1  ;;  %1421 = vmatpush1.bf16.msra.mxu0 %v1955_v2 }
 0x1bb   :  { %1475 = vmatprep.subr.bf16.mxu1 %v1960_v3  ;;  %1422 = vmatprep.subr.bf16.mxu0 %v1963_v4 }
 0x1be   :  { %1476 = vmatpush1.bf16.msra.mxu1 %v1958_v6  ;;  %1423 = vmatpush1.bf16.msra.mxu0 %v1961_v7 }
 0x1bf   :  { %1477 = vmatprep.subr.bf16.mxu1 %v1966_v8  ;;  %1424 = vmatprep.subr.bf16.mxu0 %v1969_v9 }
 0x1c2   :  { %1478 = vmatpush1.bf16.msra.mxu1 %v1964_v10  ;;  %1425 = vmatpush1.bf16.msra.mxu0 %v1967_v11 }
 0x1c3   :  { %1479 = vmatprep.subr.bf16.mxu1 %v1972_v12  ;;  %1426 = vmatprep.subr.bf16.mxu0 %v1975_v13 }
 0x1c6   :  { %1480 = vmatpush1.bf16.msra.mxu1 %v1970_v14  ;;  %1427 = vmatpush1.bf16.msra.mxu0 %v1973_v15 }
 0x1c7   :  { %1481 = vmatprep.subr.bf16.mxu1 %v1978_v16  ;;  %1428 = vmatprep.subr.bf16.mxu0 %v1981_v17 }
 0x1ca   :  { %1482 = vmatpush1.bf16.msra.mxu1 %v1976_v18  ;;  %1429 = vmatpush1.bf16.msra.mxu0 %v1979_v19 }
 0x1cb   :  { %1483 = vmatprep.subr.bf16.mxu1 %v1984_v20  ;;  %1430 = vmatprep.subr.bf16.mxu0 %v1987_v21 }
 0x1ce   :  { %1484 = vmatpush2.bf16.msra.mxu1 %v1982_v22  ;;  %1431 = vmatpush2.bf16.msra.mxu0 %v1985_v23 }
 0x1cf   :  { %1485 = vmatprep.subr.bf16.mxu1 %v1990_v24  ;;  %1432 = vmatprep.subr.bf16.mxu0 %v1993_v25 }
 0x1d2   :  { %1486 = vmatpush2.bf16.msra.mxu1 %v1988_v26  ;;  %1433 = vmatpush2.bf16.msra.mxu0 %v1991_v27 }
 0x1d3   :  { %1487 = vmatprep.subr.bf16.mxu1 %v1996_v28  ;;  %1434 = vmatprep.subr.bf16.mxu0 %v1999_v29 }
 0x1d6   :  { %1488 = vmatpush2.bf16.msra.mxu1 %v1994_v30  ;;  %1435 = vmatpush2.bf16.msra.mxu0 %v1997_v32 }
 0x1d7   :  { %1489 = vmatprep.subr.bf16.mxu1 %v2002_v33  ;;  %1436 = vmatprep.subr.bf16.mxu0 %v2005_v34 }
 0x1da   :  { %1490 = vmatpush2.bf16.msra.mxu1 %v2000_v35  ;;  %1437 = vmatpush2.bf16.msra.mxu0 %v2003_v36 }
 0x1db   :  { %1491 = vmatprep.subr.bf16.mxu1 %v2008_v38  ;;  %1438 = vmatprep.subr.bf16.mxu0 %v2011_v40 }
 0x1de   :  { %1492 = vmatpush2.bf16.msra.mxu1 %v2006_v39  ;;  %1439 = vmatpush2.bf16.msra.mxu0 %v2009_v41 }
 0x1df   :  { %1493 = vmatprep.subr.bf16.mxu1 %v2014_v42  ;;  %1440 = vmatprep.subr.bf16.mxu0 %v2017_v44 }
 0x1e2   :  { %1494 = vmatpush2.bf16.msra.mxu1 %v2012_v43  ;;  %1441 = vmatpush2.bf16.msra.mxu0 %v2015_v45 }
 0x1e3   :  { %1495 = vmatprep.subr.bf16.mxu1 %v2020_v46  ;;  %1442 = vmatprep.subr.bf16.mxu0 %v2023_v48 }
 0x1e6   :  { %1496 = vmatpush2.bf16.msra.mxu1 %v2018_v47  ;;  %1443 = vmatpush2.bf16.msra.mxu0 %v2021_v49 }
 0x1e7   :  { %1497 = vmatprep.subr.bf16.mxu1 %v2026_v50  ;;  %1444 = vmatprep.subr.bf16.mxu0 %v2029_v52 }
 0x1ea   :  { %1498 = vmatpush2.bf16.msra.mxu1 %v2024_v51  ;;  %1445 = vmatpush2.bf16.msra.mxu0 %v2027_v53 }
 0x1eb   :  { %1520 = vmatprep.subr.bf16.mxu0 %v2032_v54 }
 0x26c   :  { %v646_v62 = vpop.f32.mrf.mxu1  ;;  %v699_v63 = vpop.f32.mrf.mxu0 }
 0x26d   :  { %v647_v0 = vadd.f32 %v646_v62, %v365_v60 }
 0x26e   :  { %v648_v1 = vpop.f32.mrf.mxu1  ;;  %v701_v2 = vpop.f32.mrf.mxu0 }
 0x26f   :  { %v700_v3 = vadd.f32 %v699_v63, %v647_v0  ;;  %v649_v4 = vadd.f32 %v648_v1, %v369_v61 }
 0x270   :  { %v650_v6 = vpop.f32.mrf.mxu1  ;;  %v703_v7 = vpop.f32.mrf.mxu0 }
 0x271   :  { %vm718_vm14 = vcmp.gt.f32.partialorder %v700_v3, 0.0  ;;  %v726_v8 = vmul.f32 0.01, %v700_v3  ;;  %v702_v9 = vadd.f32 %v701_v2, %v649_v4  ;;  %v651_v10 = vadd.f32 %v650_v6, %v365_v60 }
 0x272   :  { %v652_v11 = vpop.f32.mrf.mxu1  ;;  %v705_v12 = vpop.f32.mrf.mxu0 }
 0x273   :  { %v704_v13 = vadd.f32 %v703_v7, %v651_v10  ;;  %v734_v14 = vsel %vm718_vm14, %v700_v3, %v726_v8  ;;  %v727_v15 = vmul.f32 0.01, %v702_v9  ;;  %v653_v16 = vadd.f32 %v652_v11, %v369_v61  ;;  %v2030_v3 = vld [vmem:[%s2773_s7 + $0x270] ss:$8 sps:$4 sm:$0xff]   ;;  %v2035_v7 = vld [vmem:[%s2773_s7 + $0x264] ss:$8 sps:$4 sm:$0xff]  }
 0x274   :  { %v656_v17 = vpop.f32.mrf.mxu1  ;;  %v709_v18 = vpop.f32.mrf.mxu0  ;;  %vm719_vm15 = vcmp.gt.f32.partialorder %v702_v9, 0.0  ;;  %v782_v27 = vrot.slane %v734_v14, 1  ;;  %v750_v44 = vrot.slane %v734_v14, 7 }
 0x275   :  { %vm720_vm0 = vcmp.gt.f32.partialorder %v704_v13, 0.0  ;;  %v728_v19 = vmul.f32 0.01, %v704_v13  ;;  %v657_v20 = vadd.f32 %v656_v17, %v365_v60  ;;  %v706_v21 = vadd.f32 %v705_v12, %v653_v16 }
 0x276   :  { %v658_v22 = vpop.f32.mrf.mxu1  ;;  %v711_v26 = vpop.f32.mrf.mxu0  ;;  %v2562_v28 = vsel %vm719_vm15, %v702_v9, %v727_v15  ;;  %v772_v63 = vsel %vm268_vm3, 0.0, %v750_v44 }
 0x277   :  { %v2560_v23 = vsel %vm720_vm0, %v704_v13, %v728_v19  ;;  %v710_v24 = vadd.f32 %v709_v18, %v657_v20  ;;  %v659_v25 = vadd.f32 %v658_v22, %v369_v61  ;;  %vm721_vm1 = vcmp.gt.f32.partialorder %v706_v21, 0.0 }
 0x278   :  { %v783_v29 = vrot.slane %v2560_v23, 1  ;;  %v660_v30 = vpop.f32.mrf.mxu1  ;;  %v729_v32 = vmul.f32 0.01, %v706_v21  ;;  %v752_v35 = vrot.slane %v2560_v23, 7  ;;  %v751_v40 = vrot.slane %v2562_v28, 7  ;;  %v713_v43 = vpop.f32.mrf.mxu0 }
 0x279   :  { %vm722_vm2 = vcmp.gt.f32.partialorder %v710_v24, 0.0  ;;  %v730_v33 = vmul.f32 0.01, %v710_v24  ;;  %v712_v34 = vadd.f32 %v711_v26, %v659_v25  ;;  %v661_v38 = vadd.f32 %v660_v30, %v365_v60  ;;  %v2036_v26 = vld [vmem:[%s2773_s7 + $0x250] ss:$8 sps:$4 sm:$0xff]  }
 0x27a   :  { %v2567_v36 = vsel %vm289_vm6, %v782_v27, %v783_v29  ;;  %v662_v39 = vpop.f32.mrf.mxu1  ;;  %v737_v41 = vsel %vm721_vm1, %v706_v21, %v729_v32  ;;  %v753_v51 = vsel %vm268_vm3, %v750_v44, %v752_v35  ;;  %v816_v52 = vpack.c.bf16 %v2560_v23, %v734_v14  ;;  %v2033_v14 = vld [vmem:[%s2773_s7 + $0x260] ss:$8 sps:$4 sm:$0xff]   ;;  %v2041_v30 = vld [vmem:[%s2773_s7 + $0x244] ss:$8 sps:$4 sm:$0xff]   ;;  %v2054_v44 = vld [vmem:[%s2773_s7 + $0x2f0] ss:$8 sps:$4 sm:$0xff]  }
 0x27b   :  { %v2570_v42 = vsel %vm722_vm2, %v710_v24, %v730_v33  ;;  %v754_v45 = vrot.slane %v737_v41, 7  ;;  %vm723_vm4 = vcmp.gt.f32.partialorder %v712_v34, 0.0  ;;  %v731_v47 = vmul.f32 0.01, %v712_v34  ;;  %v2039_v23 = vld [vmem:[%s2773_s7 + $0x240] ss:$8 sps:$4 sm:$0xff]  }
 0x27c   :  { %v788_v46 = vrot.slane %v2570_v42, 1  ;;  %v714_v48 = vadd.f32 %v713_v43, %v661_v38  ;;  %v663_v49 = vadd.f32 %v662_v39, %v369_v61  ;;  %v817_v50 = vpack.c.bf16 %v737_v41, %v2562_v28  ;;  %v715_v61 = vpop.f32.mrf.mxu0  ;;  %v2044_v33 = vld [vmem:[%s2773_s7 + $0x234] ss:$8 sps:$4 sm:$0xff]   ;;  %v2048_v39 = vld [vmem:[%s2773_s7 + $0x210] ss:$8 sps:$4 sm:$0xff]  }
 0x27d   :  { %v755_v54 = vsel %vm268_vm3, %v751_v40, %v754_v45  ;;  %v773_v62 = vsel %vm268_vm3, 0.0, %v751_v40  ;;  %v2589_v0 = vsel %vm723_vm4, %v712_v34, %v731_v47  ;;  %v1786_v4 = vpack.c.bf16 %v753_v51, %v772_v63  ;;  %v2042_v34 = vld [vmem:[%s2773_s7 + $0x230] ss:$8 sps:$4 sm:$0xff]   ;;  %v2050_v38 = vld [vmem:[%s2773_s7 + $0x214] ss:$8 sps:$4 sm:$0xff]  }
 0x27e   :  { %v2581_v53 = vsel %vm289_vm6, %v783_v29, %v788_v46  ;;  %vm724_vm5 = vcmp.gt.f32.partialorder %v714_v48, 0.0  ;;  %v732_v60 = vmul.f32 0.01, %v714_v48  ;;  %1499 = vmatprep.mubr.bf16.mxu1 %v817_v50  ;;  %v716_v1 = vadd.f32 %v715_v61, %v663_v49  ;;  %v2053_v40 = vld [vmem:[%s2773_s7 + $0x204] ss:$8 sps:$4 sm:$0xff]  }
 0x27f   :  { %v1802_v57 = vpack.c.bf16 %v2581_v53, %v2567_v36  ;;  %1500 = vmatmul.mubr.bf16.vlgmr.msra.gmra.mxu1 %v816_v52  ;;  %v1782_v2 = vpack.c.bf16 %v755_v54, %v773_v62  ;;  %v758_v10 = vrot.slane %v2589_v0, 7  ;;  %v790_v11 = vrot.slane %v2589_v0, 1  ;;  %v2056_v43 = vld [vmem:[%s2773_s7 + $0x2f4] ss:$8 sps:$4 sm:$0xff]   ;;  %v2057_v47 = vld [vmem:[%s2773_s7 + $0x2e0] ss:$8 sps:$4 sm:$0xff]  }
 0x280   :  { %v2594_v6 = vsel %vm724_vm5, %v714_v48, %v732_v60  ;;  %vm725_vm7 = vcmp.gt.f32.partialorder %v716_v1, 0.0  ;;  %v733_v9 = vmul.f32 0.01, %v716_v1  ;;  %v756_v12 = vrot.slane %v2570_v42, 7  ;;  %v2062_v48 = vld [vmem:[%s2773_s7 + $0x2d4] ss:$8 sps:$4 sm:$0xff]  }
 0x281   :  { %v760_v8 = vrot.slane %v2594_v6, 7  ;;  %1783 = vmatprep.mubr.msk.bf16.mxu0 %vm2325_vm8, %v1782_v2  ;;  %v786_v15 = vrot.slane %v737_v41, 1  ;;  %v822_v18 = vpack.c.bf16 %v2594_v6, %v2570_v42  ;;  %v785_v20 = vrot.slane %v2562_v28, 1  ;;  %v2051_v41 = vld [vmem:[%s2773_s7 + $0x200] ss:$8 sps:$4 sm:$0xff]  }
 0x282   :  { %1787 = vmatmul.mubr.msk.bf16.vlgmr.msra.gmra.mxu0 %vm2325_vm8, %v1786_v4  ;;  %v2607_v13 = vsel %vm725_vm7, %v716_v1, %v733_v9  ;;  %v759_v21 = vsel %vm268_vm3, %v754_v45, %v758_v10  ;;  %v757_v27 = vsel %vm268_vm3, %v752_v35, %v756_v12  ;;  %v2045_v35 = vld [vmem:[%s2773_s7 + $0x220] ss:$8 sps:$4 sm:$0xff]   ;;  %v2059_v45 = vld [vmem:[%s2773_s7 + $0x2e4] ss:$8 sps:$4 sm:$0xff]   ;;  %v2060_v49 = vld [vmem:[%s2773_s7 + $0x2d0] ss:$8 sps:$4 sm:$0xff]  }
 0x283   :  { %1521 = vmatpush1.bf16.msra.mxu0 %v2030_v3  ;;  %v762_v16 = vrot.slane %v2607_v13, 7  ;;  %v823_v17 = vpack.c.bf16 %v2607_v13, %v2589_v0  ;;  %v761_v19 = vsel %vm268_vm3, %v756_v12, %v760_v8  ;;  %v791_v24 = vsel %vm289_vm6, %v786_v15, %v790_v11  ;;  %v2065_v50 = vld [vmem:[%s2773_s7 + $0x2c4] ss:$8 sps:$4 sm:$0xff]   ;;  %v2063_v51 = vld [vmem:[%s2773_s7 + $0x2c0] ss:$8 sps:$4 sm:$0xff]  }
 0x284   :  { %1522 = vmatprep.subr.bf16.mxu0 %v2035_v7  ;;  %v1794_v28 = vpack.c.bf16 %v761_v19, %v757_v27  ;;  %v787_v29 = vsel %vm289_vm6, %v785_v20, %v786_v15  ;;  %v2068_v52 = vld [vmem:[%s2773_s7 + $0x2b4] ss:$8 sps:$4 sm:$0xff]   ;;  %v2066_v54 = vld [vmem:[%s2773_s7 + $0x2b0] ss:$8 sps:$4 sm:$0xff]   ;;  %v2071_v60 = vld [vmem:[%s2773_s7 + $0x2a4] ss:$8 sps:$4 sm:$0xff]  }
 0x285   :  { %1509 = vmatprep.mubr.bf16.mxu1 %v823_v17  ;;  %v763_v22 = vsel %vm268_vm3, %v758_v10, %v762_v16  ;;  %v1798_v32 = vpack.c.bf16 %v791_v24, %v787_v29  ;;  %v2069_v61 = vld [vmem:[%s2773_s7 + $0x2a0] ss:$8 sps:$4 sm:$0xff]   ;;  %v2074_v62 = vld [vmem:[%s2773_s7 + $0x294] ss:$8 sps:$4 sm:$0xff]   ;;  %v2072_v63 = vld [vmem:[%s2773_s7 + $0x290] ss:$8 sps:$4 sm:$0xff]  }
 0x286   :  { %v1790_v25 = vpack.c.bf16 %v763_v22, %v759_v21  ;;  %v2077_v1 = vld [vmem:[%s2773_s7 + $0x284] ss:$8 sps:$4 sm:$0xff]   ;;  %v794_v2 = vrot.slane %v2607_v13, 1  ;;  %v2075_v3 = vld [vmem:[%s2773_s7 + $0x280] ss:$8 sps:$4 sm:$0xff]   ;;  %v792_v8 = vrot.slane %v2594_v6, 1 }
 0x287   :  { %1523 = vmatpush1.bf16.msra.mxu0 %v2033_v14  ;;  %1510 = vmatmul.mubr.bf16.gmra.mxu1 %v822_v18  ;;  %v922_v14 = vld [vmem:[%s2776_s8] sm:$0x3] }
 0x288   :  { %1524 = vmatprep.subr.bf16.mxu0 %v2038_v31  ;;  %1791 = vmatprep.mubr.msk.bf16.mxu0 %vm2372_vm12, %v1790_v25  ;;  %v795_v4 = vsel %vm289_vm6, %v790_v11, %v794_v2  ;;  %v805_v7 = vsel %vm289_vm6, %v794_v2, 0.0  ;;  %v793_v0 = vsel %vm289_vm6, %v788_v46, %v792_v8  ;;  %v804_v10 = vsel %vm289_vm6, %v792_v8, 0.0 }
 0x289   :  { %v1806_v9 = vpack.c.bf16 %v805_v7, %v795_v4  ;;  %v1810_v11 = vpack.c.bf16 %v804_v10, %v793_v0  ;;  %v927_v46 = vrot.slane %v922_v14, %v364_v55  ;;  %v931_v58 = vrot.slane %v922_v14, %v368_v59 }
 0x28a   :  { %1795 = vmatmul.mubr.msk.bf16.gmra.mxu0 %vm2372_vm12, %v1794_v28 }
 0x28b   :  { %1525 = vmatpush1.bf16.msra.mxu0 %v2036_v26  ;;  %1799 = vmatprep.mubr.msk.bf16.mxu0 %vm2336_vm9, %v1798_v32 }
 0x28c   :  { %1526 = vmatprep.subr.bf16.mxu0 %v2041_v30 }
 0x28f   :  { %1527 = vmatpush1.bf16.msra.mxu0 %v2039_v23 }
 0x290   :  { %1528 = vmatprep.subr.bf16.mxu0 %v2044_v33 }
 0x293   :  { %1529 = vmatpush1.bf16.msra.mxu0 %v2042_v34 }
 0x294   :  { %1530 = vmatprep.subr.bf16.mxu0 %v2047_v56 }
 0x297   :  { %1531 = vmatpush1.bf16.msra.mxu0 %v2045_v35 }
 0x298   :  { %1532 = vmatprep.subr.bf16.mxu0 %v2050_v38 }
 0x29b   :  { %1533 = vmatpush1.bf16.msra.mxu0 %v2048_v39 }
 0x29c   :  { %1534 = vmatprep.subr.bf16.mxu0 %v2053_v40 }
 0x29f   :  { %1535 = vmatpush1.bf16.msra.mxu0 %v2051_v41 }
 0x2a0   :  { %1536 = vmatprep.subr.bf16.mxu0 %v2056_v43 }
 0x2a3   :  { %1537 = vmatpush2.bf16.msra.mxu0 %v2054_v44 }
 0x2a4   :  { %1538 = vmatprep.subr.bf16.mxu0 %v2059_v45 }
 0x2a7   :  { %1539 = vmatpush2.bf16.msra.mxu0 %v2057_v47 }
 0x2a8   :  { %1540 = vmatprep.subr.bf16.mxu0 %v2062_v48 }
 0x2ab   :  { %1541 = vmatpush2.bf16.msra.mxu0 %v2060_v49 }
 0x2ac   :  { %1542 = vmatprep.subr.bf16.mxu0 %v2065_v50 }
 0x2af   :  { %1543 = vmatpush2.bf16.msra.mxu0 %v2063_v51 }
 0x2b0   :  { %1544 = vmatprep.subr.bf16.mxu0 %v2068_v52 }
 0x2b3   :  { %1545 = vmatpush2.bf16.msra.mxu0 %v2066_v54 }
 0x2b4   :  { %1546 = vmatprep.subr.bf16.mxu0 %v2071_v60 }
 0x2b7   :  { %1547 = vmatpush2.bf16.msra.mxu0 %v2069_v61 }
 0x2b8   :  { %1548 = vmatprep.subr.bf16.mxu0 %v2074_v62 }
 0x2bb   :  { %1549 = vmatpush2.bf16.msra.mxu0 %v2072_v63 }
 0x2bc   :  { %1550 = vmatprep.subr.bf16.mxu0 %v2077_v1 }
 0x2bf   :  { %1551 = vmatpush2.bf16.msra.mxu0 %v2075_v3 }
 0x2c2   :  { %1803 = vmatmul.mubr.msk.bf16.vlgmr.msra.gmra.mxu0 %vm2336_vm9, %v1802_v57 }
 0x2c3   :  { %1807 = vmatprep.mubr.msk.bf16.mxu0 %vm2378_vm13, %v1806_v9 }
 0x2ca   :  { %1811 = vmatmul.mubr.msk.bf16.gmra.mxu0 %vm2378_vm13, %v1810_v11 }
 0x33f   :  { %v1501_v53 = vpop.f32.mrf.mxu1 }
 0x341   :  { %v1503_v57 = vpop.f32.mrf.mxu1 }
 0x342   :  { %v1448_v6 = vpop.f32.mrf.mxu0 }
 0x343   :  { %v1505_v15 = vpop.f32.mrf.mxu1  ;;  %v1449_v17 = vadd.f32 %v1448_v6, %v927_v46 }
 0x344   :  { %v1450_v12 = vpop.f32.mrf.mxu0 }
 0x345   :  { %v1507_v31 = vpop.f32.mrf.mxu1  ;;  %v1451_v18 = vadd.f32 %v1450_v12, %v931_v58  ;;  %v1502_v22 = vadd.f32 %v1501_v53, %v1449_v17 }
 0x346   :  { %v1452_v13 = vpop.f32.mrf.mxu0 }
 0x347   :  { %v1453_v20 = vadd.f32 %v1452_v13, %v927_v46  ;;  %v1511_v21 = vpop.f32.mrf.mxu1  ;;  %v1504_v27 = vadd.f32 %v1503_v57, %v1451_v18 }
 0x348   :  { %v1454_v36 = vpop.f32.mrf.mxu0 }
 0x349   :  { %v1455_v24 = vadd.f32 %v1454_v36, %v931_v58  ;;  %v1513_v30 = vpop.f32.mrf.mxu1  ;;  %v1506_v5 = vadd.f32 %v1505_v15, %v1453_v20 }
 0x34a   :  { %v1458_v37 = vpop.f32.mrf.mxu0 }
 0x34b   :  { %v1459_v28 = vadd.f32 %v1458_v37, %v927_v46  ;;  %v1508_v33 = vadd.f32 %v1507_v31, %v1455_v24  ;;  %v1515_v41 = vpop.f32.mrf.mxu1 }
 0x34c   :  { %v1460_v42 = vpop.f32.mrf.mxu0 }
 0x34d   :  { %v1461_v59 = vadd.f32 %v1460_v42, %v931_v58  ;;  %v1512_v40 = vadd.f32 %v1511_v21, %v1459_v28  ;;  %v1517_v61 = vpop.f32.mrf.mxu1 }
 0x34e   :  { %v1462_v16 = vpop.f32.mrf.mxu0 }
 0x34f   :  { %v1463_v38 = vadd.f32 %v1462_v16, %v927_v46  ;;  %v1514_v49 = vadd.f32 %v1513_v30, %v1461_v59 }
 0x350   :  { %v1464_v19 = vpop.f32.mrf.mxu0 }
 0x351   :  { %v1465_v47 = vadd.f32 %v1464_v19, %v931_v58  ;;  %v1516_v60 = vadd.f32 %v1515_v41, %v1463_v38 }
 0x353   :  { %v1518_v3 = vadd.f32 %v1517_v61, %v1465_v47 }
 0x382   :  { %v1554_v25 = vpop.f32.mrf.mxu0 }
 0x383   :  { %v1555_v26 = vadd.f32 %v1554_v25, %v1502_v22 }
 0x384   :  { %v1556_v29 = vpop.f32.mrf.mxu0 }
 0x385   :  { %vm1573_vm3 = vcmp.gt.f32.partialorder %v1555_v26, 0.0  ;;  %v1581_v55 = vmul.f32 0.01, %v1555_v26  ;;  %v1557_v32 = vadd.f32 %v1556_v29, %v1504_v27 }
 0x386   :  { %v1558_v23 = vpop.f32.mrf.mxu0 }
 0x387   :  { %v1589_v34 = vsel %vm1573_vm3, %v1555_v26, %v1581_v55  ;;  %vm1574_vm6 = vcmp.gt.f32.partialorder %v1557_v32, 0.0  ;;  %v1582_v56 = vmul.f32 0.01, %v1557_v32  ;;  %v1559_v35 = vadd.f32 %v1558_v23, %v1506_v5 }
 0x388   :  { %1597 = vst [vmem:[%s2777_s9] sm:$0xff] %v1589_v34  ;;  %v1560_v39 = vpop.f32.mrf.mxu0 }
 0x389   :  { %v1590_v43 = vsel %vm1574_vm6, %v1557_v32, %v1582_v56  ;;  %vm1575_vm8 = vcmp.gt.f32.partialorder %v1559_v35, 0.0  ;;  %v1583_v44 = vmul.f32 0.01, %v1559_v35  ;;  %v1561_v45 = vadd.f32 %v1560_v39, %v1508_v33 }
 0x38a   :  { %1598 = vst [vmem:[%s2777_s9 + $0x8] sm:$0xff] %v1590_v43  ;;  %v1564_v48 = vpop.f32.mrf.mxu0 }
 0x38b   :  { %v1591_v50 = vsel %vm1575_vm8, %v1559_v35, %v1583_v44  ;;  %vm1576_vm9 = vcmp.gt.f32.partialorder %v1561_v45, 0.0  ;;  %v1584_v51 = vmul.f32 0.01, %v1561_v45  ;;  %v1565_v52 = vadd.f32 %v1564_v48, %v1512_v40 }
 0x38c   :  { %1599 = vst [vmem:[%s2777_s9 + $0x10] sm:$0xff] %v1591_v50  ;;  %v1566_v54 = vpop.f32.mrf.mxu0 }
 0x38d   :  { %v1592_v62 = vsel %vm1576_vm9, %v1561_v45, %v1584_v51  ;;  %vm1577_vm10 = vcmp.gt.f32.partialorder %v1565_v52, 0.0  ;;  %v1585_v63 = vmul.f32 0.01, %v1565_v52  ;;  %v1567_v1 = vadd.f32 %v1566_v54, %v1514_v49 }
 0x38e   :  { %1600 = vst [vmem:[%s2777_s9 + $0x18] sm:$0xff] %v1592_v62  ;;  %v1568_v2 = vpop.f32.mrf.mxu0 }
 0x38f   :  { %v1593_v4 = vsel %vm1577_vm10, %v1565_v52, %v1585_v63  ;;  %vm1578_vm11 = vcmp.gt.f32.partialorder %v1567_v1, 0.0  ;;  %v1586_v7 = vmul.f32 0.01, %v1567_v1  ;;  %v1569_v8 = vadd.f32 %v1568_v2, %v1516_v60 }
 0x390   :  { %1601 = vst [vmem:[%s2777_s9 + $0x20] sm:$0xff] %v1593_v4  ;;  %v1570_v9 = vpop.f32.mrf.mxu0 }
 0x391   :  { %v1594_v0 = vsel %vm1578_vm11, %v1567_v1, %v1586_v7  ;;  %vm1579_vm12 = vcmp.gt.f32.partialorder %v1569_v8, 0.0  ;;  %v1587_v10 = vmul.f32 0.01, %v1569_v8  ;;  %v1571_v11 = vadd.f32 %v1570_v9, %v1518_v3 }
 0x392   :  { %1602 = vst [vmem:[%s2777_s9 + $0x28] sm:$0xff] %v1594_v0 }
 0x393   :  { %v1595_v6 = vsel %vm1579_vm12, %v1569_v8, %v1587_v10  ;;  %vm1580_vm13 = vcmp.gt.f32.partialorder %v1571_v11, 0.0  ;;  %v1588_v12 = vmul.f32 0.01, %v1571_v11 }
 0x394   :  { %1603 = vst [vmem:[%s2777_s9 + $0x30] sm:$0xff] %v1595_v6 }
 0x395   :  { %v1596_v13 = vsel %vm1580_vm13, %v1571_v11, %v1588_v12 }
 0x396   :  { %1604 = vst [vmem:[%s2777_s9 + $0x38] sm:$0xff] %v1596_v13 }

</bundles_post_ra>
